<compile_context>
chip_gen: v7x
topology: tpu7x:2x2x1
jax: 0.10.0
libtpu: 0.0.40
codegen_flags: <defaults>
</compile_context>

<pallas_src>
import jax
import jax.numpy as jnp
from jax.experimental import pallas as pl
from jax.experimental.pallas import tpu as pltpu

_MIB = 1024 * 1024
# Below this many output elements the fixed pallas_call overhead + 128-lane
# padding make the Pallas path slower than fused XLA -> fall back.
_PALLAS_MIN_OUT_ELEMS = 1 << 18  # 256K elements


def _round_up(x, mult):
    return ((x + mult - 1) // mult) * mult


def _pick_tile(dim, max_tile, align):
    """Largest tile (multiple of `align`, <= max_tile) with <=~25% padding waste."""
    dim_a = _round_up(dim, align)
    if dim_a <= max_tile:
        return dim_a
    t = max_tile
    while t > align and _round_up(dim, t) > (5 * dim_a) // 4:
        t //= 2
    return max(t, align)


# ---------------------------------------------------------------------------
# Pallas kernel: batched matmul  O[b] = X[b] @ Y[b]   (no reduction grid axis)
# ---------------------------------------------------------------------------
def _gram_kernel(x_ref, y_ref, o_ref):
    # x_ref: (bb, tn, Kp), y_ref: (bb, Kp, tm), o_ref: (bb, tn, tm)
    # MXU-native batched matmul, f32 accumulation, written straight to the
    # output block: no scratch accumulator, no extra VMEM copy pass.
    o_ref[...] = jnp.einsum(
        "bnk,bkm->bnm",
        x_ref[...],
        y_ref[...],
        preferred_element_type=jnp.float32,
    ).astype(o_ref.dtype)


def _pallas_batched_matmul(Xe, YeT, out_dtype):
    """Batched Xe @ YeT via a tiled Pallas kernel.

    Xe : (B, N, K)  lhs, contraction on the last dim (MXU native)
    YeT: (B, K, M)  rhs, contraction on sublanes, large dim M on lanes
    Returns (B, N, M) in out_dtype.
    """
    assert Xe.dtype == YeT.dtype, (Xe.dtype, YeT.dtype)
    B_, N, K = Xe.shape
    B2, K2, M = YeT.shape
    assert B_ == B2 and K == K2, (Xe.shape, YeT.shape)

    in_dtype = Xe.dtype
    itemsize = jnp.dtype(in_dtype).itemsize
    out_itemsize = jnp.dtype(out_dtype).itemsize
    sub_min = max(8, 32 // itemsize)  # 8 f32 / 16 bf16 / 32 int8 sublane tile

    # Contraction dim kept whole (input_dim is tiny for this module); pad to a
    # legal sublane multiple.  Zero padding contributes nothing to the dots.
    Kp = _round_up(K, sub_min)

    # Tile sizes: big lane-dense output tiles (unmasked vst), modest waste.
    tn = _pick_tile(N, 256, sub_min)   # sublanes of the output tile
    tm = _pick_tile(M, 512, 128)       # lanes of the output tile

    # Generation-aware VMEM budgeting (v7x has 64 MiB/TC, v5e/v6e 128 MiB).
    try:
        vmem_cap = int(pltpu.get_tpu_info().vmem_capacity_bytes)
    except Exception:
        vmem_cap = 64 * _MIB  # conservative default (v7x-safe)
    if vmem_cap >= 96 * _MIB:
        budget, vmem_limit = 48 * _MIB, 80 * _MIB
    else:
        budget, vmem_limit = 24 * _MIB, 48 * _MIB

    # Real per-batch-element working set, including VMEM lane/sublane padding
    # of every block and the 2x double buffering done by the BlockSpec pipeline.
    x_tile = _round_up(tn, sub_min) * _round_up(Kp, 128) * itemsize
    y_tile = _round_up(Kp, sub_min) * _round_up(tm, 128) * itemsize
    o_tile = _round_up(tn, sub_min) * _round_up(tm, 128) * out_itemsize
    per_b = 2 * (x_tile + y_tile + o_tile)
    bb = int(max(1, min(budget // per_b, B_, 128)))

    N_p = _round_up(N, tn)
    M_p = _round_up(M, tm)
    B_p = _round_up(B_, bb)

    # Make sure the grid has >= 2 steps so both TensorCores get work on v7x
    # (harmless on single-TC chips).
    if (B_p // bb) * (N_p // tn) * (M_p // tm) < 2:
        if B_ > 1:
            bb = (B_ + 1) // 2
        elif N >= 2 * sub_min:
            tn = _round_up(max(sub_min, (N + 1) // 2), sub_min)
        elif M >= 256:
            tm = _round_up(max(128, (M + 1) // 2), 128)
        N_p = _round_up(N, tn)
        M_p = _round_up(M, tm)
        B_p = _round_up(B_, bb)

    # Zero-pad only when needed (padded rows/cols/batches are sliced off once
    # at the very end; padded K contributes 0 to every dot product).
    if (B_p, N_p, Kp) != Xe.shape:
        Xe = jnp.pad(Xe, ((0, B_p - B_), (0, N_p - N), (0, Kp - K)))
    if (B_p, Kp, M_p) != YeT.shape:
        YeT = jnp.pad(YeT, ((0, B_p - B_), (0, Kp - K), (0, M_p - M)))

    grid = (B_p // bb, N_p // tn, M_p // tm)

    cost = pl.CostEstimate(
        flops=2 * B_p * N_p * M_p * Kp,
        transcendentals=0,
        bytes_accessed=(itemsize * B_p * (N_p * Kp + Kp * M_p)
                        + out_itemsize * B_p * N_p * M_p),
    )

    out = pl.pallas_call(
        _gram_kernel,
        out_shape=jax.ShapeDtypeStruct((B_p, N_p, M_p), out_dtype),
        grid_spec=pltpu.PrefetchScalarGridSpec(
            num_scalar_prefetch=0,
            grid=grid,
            in_specs=[
                pl.BlockSpec((bb, tn, Kp), lambda b, i, j: (b, i, 0)),
                pl.BlockSpec((bb, Kp, tm), lambda b, i, j: (b, 0, j)),
            ],
            out_specs=pl.BlockSpec((bb, tn, tm), lambda b, i, j: (b, i, j)),
        ),
        compiler_params=pltpu.CompilerParams(
            dimension_semantics=("parallel", "parallel", "parallel"),
            vmem_limit_bytes=int(vmem_limit),
        ),
        cost_estimate=cost,
    )(Xe, YeT)

    if (B_p, N_p, M_p) != (B_, N, M):
        out = out[:B_, :N, :M]
    return out


# ---------------------------------------------------------------------------
# SeparableKernel forward (wrapper)
# ---------------------------------------------------------------------------
def separable_kernel_forward(X, Y=None, B_mat=None, rkhs_dim=1, flatten=True,
                             out_dtype=None, min_pallas_out_elems=None):
    """JAX/Pallas equivalent of steer_cnp SeparableKernel.forward with a
    dot-product ScalarKernel.

    X: (n, d) or (b, n, d); Y: same convention or None (defaults to X).
    Returns (b, n*D1, m*D2) if flatten else (b, n, m, D1, D2).
    """
    if Y is None:
        Y = X
    X = jnp.asarray(X)
    Y = jnp.asarray(Y)
    if X.ndim == 2:
        X = X[None, ...]
    if Y.ndim == 2:
        Y = Y[None, ...]
    assert X.ndim == 3 and Y.ndim == 3, "inputs must be (n, d) or (b, n, d)"

    bx, by = X.shape[0], Y.shape[0]
    if bx != by:
        if bx == 1:
            X = jnp.broadcast_to(X, (by,) + X.shape[1:])
        elif by == 1:
            Y = jnp.broadcast_to(Y, (bx,) + Y.shape[1:])
        else:
            raise ValueError(f"incompatible batch sizes {bx} vs {by}")

    if B_mat is None:
        B_mat = jnp.eye(rkhs_dim, dtype=X.dtype)
    B_mat = jnp.asarray(B_mat)
    D1, D2 = B_mat.shape

    b, n, d = X.shape
    _, m, _ = Y.shape
    cdt = jnp.result_type(X.dtype, Y.dtype, B_mat.dtype)
    odt = cdt if out_dtype is None else jnp.dtype(out_dtype)
    thr = (_PALLAS_MIN_OUT_ELEMS if min_pallas_out_elems is None
           else min_pallas_out_elems)

    if flatten:
        N, M = n * D1, m * D2
        if b * N * M < thr:
            # Small-problem fallback: fused XLA is faster than pallas_call
            # launch/step overhead + 128-lane padding at these sizes.
            K = jnp.einsum("bnd,bmd->bnm", X, Y)
            K5 = K[..., None, None] * B_mat
            return jnp.transpose(K5, (0, 1, 3, 2, 4)).reshape(b, N, M).astype(odt)

        # Fuse the separable expansion + Kronecker flatten into the matmul by
        # expanding the (tiny) inputs; the kernel then writes the final
        # flattened layout to HBM exactly once.
        Xe = jnp.einsum("bit,dr->bidrt", X, B_mat).reshape(b, N, D2 * d)
        eye = jnp.eye(D2, dtype=cdt)
        YeT = jnp.einsum("bjt,rs->brtjs", Y.astype(cdt), eye).reshape(b, D2 * d, M)
        return _pallas_batched_matmul(Xe.astype(cdt), YeT.astype(cdt), odt)

    # flatten=False: compute the scalar gram (Pallas when big enough), then the
    # (b, n, m, D, D) broadcast -- the output format itself is the expanded
    # tensor, so one XLA broadcast-multiply write is already minimal.
    # TODO(synk): the flatten=False D^2 broadcast is left to XLA by design.
    if b * n * m < thr:
        K = jnp.einsum("bnd,bmd->bnm", X, Y)
    else:
        K = _pallas_batched_matmul(
            X.astype(cdt), jnp.swapaxes(Y, 1, 2).astype(cdt), cdt)
    return (K[..., None, None] * B_mat).astype(odt)


class SeparableDotProductKernel:
    """Thin module-like wrapper mirroring steer_cnp.SeparableKernel.

    # TODO(synk): the reference ScalarKernel is abstract; a dot-product scalar
    # kernel K(x, y) = <x, y> is used here (same choice as the previously
    # accepted version).
    """

    def __init__(self, input_dim, rkhs_dim, B=None, out_dtype=None,
                 min_pallas_out_elems=None):
        self.input_dim = input_dim
        self.rkhs_dim = rkhs_dim
        self.B = (jnp.eye(rkhs_dim, dtype=jnp.float32) if B is None
                  else jnp.asarray(B))
        self.out_dtype = out_dtype
        self.min_pallas_out_elems = min_pallas_out_elems

    def __call__(self, X, Y=None, flatten=True):
        return separable_kernel_forward(
            X, Y, B_mat=self.B, rkhs_dim=self.rkhs_dim, flatten=flatten,
            out_dtype=self.out_dtype,
            min_pallas_out_elems=self.min_pallas_out_elems)


# ---------------------------------------------------------------------------
# Pure-JAX reference for correctness checks
# ---------------------------------------------------------------------------
def _reference(X, Y, B_mat, flatten=True):
    if Y is None:
        Y = X
    if X.ndim == 2:
        X = X[None, ...]
    if Y.ndim == 2:
        Y = Y[None, ...]
    bx, by = X.shape[0], Y.shape[0]
    if bx != by:
        if bx == 1:
            X = jnp.broadcast_to(X, (by,) + X.shape[1:])
        else:
            Y = jnp.broadcast_to(Y, (bx,) + Y.shape[1:])
    K = jnp.einsum("bnd,bmd->bnm", X, Y)
    K = K[..., None, None] * B_mat
    if flatten:
        b, n, m, d1, d2 = K.shape
        K = jnp.transpose(K, (0, 1, 3, 2, 4)).reshape(b, n * d1, m * d2)
    return K


if __name__ == "__main__":
    key = jax.random.PRNGKey(0)
    kx, ky, kb, kx2, kx3, ky3 = jax.random.split(key, 6)

    rkhs, d = 2, 3
    Bmat = jax.random.normal(kb, (rkhs, rkhs), dtype=jnp.float32)
    kern = SeparableDotProductKernel(input_dim=d, rkhs_dim=rkhs, B=Bmat)

    # 1) Small batched case (small-problem fallback), flattened (b, n*D, m*D).
    batch, n, m = 2, 8, 8
    X = jax.random.normal(kx, (batch, n, d), dtype=jnp.float32)
    Y = jax.random.normal(ky, (batch, m, d), dtype=jnp.float32)
    out = jax.block_until_ready(kern(X, Y))
    ref = _reference(X, Y, Bmat, flatten=True)
    assert out.shape == (batch, n * rkhs, m * rkhs), out.shape
    assert jnp.allclose(out, ref, atol=1e-5, rtol=1e-5)

    # 2) Small batched, unflattened (b, n, m, D, D).
    out_nf = jax.block_until_ready(kern(X, Y, flatten=False))
    ref_nf = _reference(X, Y, Bmat, flatten=False)
    assert out_nf.shape == (batch, n, m, rkhs, rkhs), out_nf.shape
    assert jnp.allclose(out_nf, ref_nf, atol=1e-5, rtol=1e-5)

    # 3) Non-batched input, Y=None (uprank path; the reference `K.squeeze(0)`
    #    is a no-op, so the batch dim of size 1 is kept).
    X2 = jax.random.normal(kx2, (n, d), dtype=jnp.float32)
    out2 = jax.block_until_ready(kern(X2))
    ref2 = _reference(X2, None, Bmat, flatten=True)
    assert out2.shape == (1, n * rkhs, n * rkhs), out2.shape
    assert jnp.allclose(out2, ref2, atol=1e-5, rtol=1e-5)

    # 4) Moderate, non-aligned shapes -> fused Pallas path (input expansion,
    #    padding + tiling + batch blocking, single lane-dense HBM write of the
    #    flattened layout).
    b3, n3, m3 = 2, 264, 200
    X3 = jax.random.normal(kx3, (b3, n3, d), dtype=jnp.float32)
    Y3 = jax.random.normal(ky3, (b3, m3, d), dtype=jnp.float32)
    out3 = jax.block_until_ready(kern(X3, Y3))
    ref3 = _reference(X3, Y3, Bmat, flatten=True)
    assert out3.shape == (b3, n3 * rkhs, m3 * rkhs), out3.shape
    assert jnp.allclose(out3, ref3, atol=1e-4, rtol=1e-4)

    # 5) Force the Pallas path on a small, awkward shape to exercise the
    #    padding/slice and megacore-split logic.
    kern_force = SeparableDotProductKernel(
        input_dim=d, rkhs_dim=rkhs, B=Bmat, min_pallas_out_elems=0)
    b5, n5, m5 = 2, 40, 24
    X5 = jax.random.normal(kx, (b5, n5, d), dtype=jnp.float32)
    Y5 = jax.random.normal(ky, (b5, m5, d), dtype=jnp.float32)
    out5 = jax.block_until_ready(kern_force(X5, Y5))
    ref5 = _reference(X5, Y5, Bmat, flatten=True)
    assert out5.shape == (b5, n5 * rkhs, m5 * rkhs), out5.shape
    assert jnp.allclose(out5, ref5, atol=1e-5, rtol=1e-5)

    # 6) flatten=False through the Pallas scalar-gram path.
    out6 = jax.block_until_ready(kern_force(X5, Y5, flatten=False))
    ref6 = _reference(X5, Y5, Bmat, flatten=False)
    assert out6.shape == (b5, n5, m5, rkhs, rkhs), out6.shape
    assert jnp.allclose(out6, ref6, atol=1e-5, rtol=1e-5)

    print("KERNEL_OK")
</pallas_src>

<mosaic_0001>
module attributes {stable_mosaic.version = 11 : i64} {
  func.func @_gram_kernel(%arg0: i32, %arg1: i32, %arg2: i32, %arg3: memref<2x128x8xf32, #tpu.memory_space<vmem>>, %arg4: memref<2x8x512xf32, #tpu.memory_space<vmem>>, %arg5: memref<2x128x512xf32, #tpu.memory_space<vmem>>) attributes {dimension_semantics = [#tpu.dimension_semantics<parallel>, #tpu.dimension_semantics<parallel>, #tpu.dimension_semantics<parallel>], iteration_bounds = array<i64: 1, 5, 1>, scalar_prefetch = 0 : i64, scratch_operands = 0 : i64, tpu.core_type = #tpu.core_type<tc>, window_params = [{transform_indices = @transform_0, window_bounds = array<i64: 2, 128, 8>}, {transform_indices = @transform_1, window_bounds = array<i64: 2, 8, 512>}, {transform_indices = @transform_2, window_bounds = array<i64: 2, 128, 512>}]} {
    %c0 = arith.constant 0 : index
    %c0_0 = arith.constant 0 : index
    %c0_1 = arith.constant 0 : index
    %0 = vector.load %arg3[%c0, %c0_0, %c0_1] : memref<2x128x8xf32, #tpu.memory_space<vmem>>, vector<2x128x8xf32>
    %c0_2 = arith.constant 0 : index
    %c0_3 = arith.constant 0 : index
    %c0_4 = arith.constant 0 : index
    %1 = vector.load %arg4[%c0_2, %c0_3, %c0_4] : memref<2x8x512xf32, #tpu.memory_space<vmem>>, vector<2x8x512xf32>
    "tpu.trace_start"() <{level = 10 : i32, message = "bnk,bkm->bnm"}> : () -> ()
    %cst = arith.constant dense<0.000000e+00> : vector<2x128x512xf32>
    %2 = tpu.matmul %0, %1, %cst {dimension_numbers = #tpu.dot_dimension_numbers<[2], [1], [1], [2], [0, 0, 0, 1, 1, 2], [0], [0]>} : vector<2x128x8xf32>, vector<2x8x512xf32>, vector<2x128x512xf32> -> vector<2x128x512xf32>
    "tpu.trace_stop"() : () -> ()
    %c0_5 = arith.constant 0 : index
    %c0_6 = arith.constant 0 : index
    %c0_7 = arith.constant 0 : index
    %3 = vector.load %arg5[%c0_5, %c0_6, %c0_7] : memref<2x128x512xf32, #tpu.memory_space<vmem>>, vector<2x128x512xf32>
    tpu.vector_store %arg5[%c0_5, %c0_6, %c0_7], %2 {strides = array<i32>} : memref<2x128x512xf32, #tpu.memory_space<vmem>>, vector<2x128x512xf32>,
    return
  }
  func.func @transform_0(%arg0: i32, %arg1: i32, %arg2: i32) -> (i32, i32, i32) {
    %c0_i32 = arith.constant 0 : i32
    %c0_i32_0 = arith.constant 0 : i32
    return %arg0, %arg1, %c0_i32 : i32, i32, i32
  }
  func.func @transform_1(%arg0: i32, %arg1: i32, %arg2: i32) -> (i32, i32, i32) {
    %c0_i32 = arith.constant 0 : i32
    %c0_i32_0 = arith.constant 0 : i32
    return %arg0, %c0_i32, %arg2 : i32, i32, i32
  }
  func.func @transform_2(%arg0: i32, %arg1: i32, %arg2: i32) -> (i32, i32, i32) {
    %c0_i32 = arith.constant 0 : i32
    return %arg0, %arg1, %arg2 : i32, i32, i32
  }
}

</mosaic_0001>

<bundles_post_ra>
// kernel: tpu_custom_call.1
= control target key start
LH: loop header
LB: loop body
LE: loop exit
PB: predicated region body
PF: predicated region fallthrough
CT: control target
= control target key end

     0   :  { %7 = vsyncpa [#allocation4], 0  ;;  %s2216_s0 = inlined_call_operand.vmem [shape: f32[2,640,8], index: 0, kind: input, shape index: {}]   ;;  %s2217_s1 = inlined_call_operand.hbm [shape: f32[2,8,512], index: 1, kind: input, shape index: {}]   ;;  %s2218_s2 = inlined_call_operand.hbm [shape: f32[2,640,512], index: 2, kind: output, shape index: {}]  }
   0x1   :  { %8 = vsyncpa [#allocation5], 0 }
   0x2   :  { %10 = vsyncpa [#allocation5 + $0x1], 0  ;;  %s1703_s9 = smov 0   ;;  %s1705_s10 = smov 0  }
   0x3   :  { %s1707_s11 = smov 0   ;;  %s1709_s12 = smov 0  }
   0x4   :  { %s1711_s13 = smov 0   ;;  %s1713_s14 = smov 0  }
   0x5 LB: > { %s1426_s15 = sadd.s32 4294967295, %s1675_s14   ;;  %s1427_s16 = sadd.s32 4294967294, %s1675_s14   ;;  %s1675_s14 = sphi %s1713_s14, %s16_s14   ;;  %s1671_s13 = sphi %s1711_s13, %s2238_s13   ;;  %s1667_s12 = sphi %s1709_s12, %s2237_s12   ;;  %s1663_s11 = sphi %s1707_s11, %s2236_s11   ;;  %s1659_s10 = sphi %s1705_s10, %s2235_s10   ;;  %s1655_s9 = sphi %s1703_s9, %s2234_s9  }
   0x6   : > { %s31_s17 = sadd.s32 1, %s1671_s13  ;;  %s44_s18 = sadd.s32 1, %s1663_s11 }
   0x7   : > { %p33_p0 = scmp.ge.s32.totalorder %s31_s17, 5  ;;  %p51_p1 = scmp.ne.s32.totalorder %s1663_s11, %s1659_s10 }
   0x8   : > { %p52_p2 = scmp.eq.s32.totalorder %s1675_s14, 0  ;;  %p113_p3 = scmp.eq.s32.totalorder %s1426_s15, 4 }
   0x9   : > { %s2240_s17 = smov (%p33_p0, %s31_s17), 0  ;;  %p118_p6 = scmp.ne.s32.totalorder %s1659_s10, %s1655_s9 }
   0xa   : > { %p1742_p4 = por %p52_p2, %p51_p1  ;;  %p1746_p5 = por %p113_p3, %p51_p1 }
   0xb   : > { %s40_s21 = ssub.s32 %s1671_s13, %s2240_s17  ;;  %p119_p8 = scmp.eq.s32.totalorder %s1427_s16, 4 }
   0xc   : > { %s2223_s19 = scalar_select %p1742_p4, 1, 0 }
   0xd   : > { %s2224_s20 = scalar_select %p1746_p5, 1, 0 }
   0xe   : > { %p42_p7 = scmp.eq.s32.totalorder %s40_s21, 0  ;;  %p1428_p9 = scmp.ge.s32.totalorder %s1675_s14, 1 }
   0xf   : > { %p126_p10 = scmp.lt.s32.totalorder %s1675_s14, 6  ;;  %p1759_p11 = por %p119_p8, %p118_p6 }
  0x10   : > { %s1757_s22 = scalar_select %p42_p7, %s1663_s11, %s44_s18  }
  0x11   : > { %s2225_s23 = scalar_select %p1759_p11, 1, 0 }
  0x12   : > { %p1763_p12 = pnand %p1428_p9, %p126_p10  ;;  %p1767_p13 = scmp.eq.s32.totalorder %s1426_s15, 0 }
  0x13   : > { %s1677_s26 = smov [#allocation3]   ;;  %s1593_s3 = scalar_lea.hbm %s2217_s1, 1024 }
  0x14   : > { %s2226_s24 = scalar_select %p1763_p12, 1, 0 }
  0x15   : > { %s2227_s25 = scalar_select %p1767_p13, 1, 0 }
  0x16   : > { %p1523_p0 = pneg %p1763_p12  ;;  %s144_s27 = sshll.u32 %s1677_s26, 4  ;;  %s145_s27 = int_to_ptr.vmem [resolvable:$true] %s144_s27 }
  0x17   : > { %p1594_p2 = scmp.ne.s32.totalorder %s2217_s1, %s1593_s3  ;;  %p1600_p8 = scmp.lt.u32.totalorder %s1593_s3, %s2217_s1 }
  0x18   : > { %p1775_p1 = pnand %p1767_p13, %p1523_p0 }
  0x1a   : > { %p1595_p3 = pneg %p1775_p1 }
  0x1c   : > { %p1596_p6 = pnand %p1595_p3, %p1594_p2 }
  0x1e   : > { %p1597_p7 = pneg %p1596_p6 }
  0x20   : > { %p1602_p9 = pnand %p1600_p8, %p1597_p7 }
  0x22   : > { %1605 = shalt.err (!%p1602_p9)
}
  0x23   : > { %s1606_s8 = scalar_lea.vmem %s145_s27, 1024  ;;  %p1614_p5 = scmp.lt.s32.totalorder %s145_s27, %s145_s27 }
  0x24   : > { %p1607_p10 = scmp.ne.s32.totalorder %s145_s27, %s1606_s8  ;;  %p1615_p13 = scmp.lt.s32.totalorder %s1606_s8, %s1606_s8 }
  0x26   : > { %p1609_p0 = pnand %p1607_p10, %p1595_p3  ;;  %p1616_p12 = por %p1615_p13, %p1614_p5 }
  0x28   : > { %p1610_p11 = pneg %p1609_p0 }
  0x2a   : > { %p1617_p4 = pnand %p1616_p12, %p1610_p11 }
  0x2c   : > { %1620 = shalt.err (!%p1617_p4)
}
  0x2d   : > { %s1678_s15 = smov 512   ;;  %s1679_s16 = smov 32  }
  0x2e   : > { %1526 = dma.hbm_to_vmem [thread:$0]  (!%p1775_p1), %s2217_s1, 1024, %s145_s27, [#allocation4], %s1678_s15, %s1678_s15, %s1679_s16  }
  0x2f   : > { %p1430_p2 = scmp.ge.s32.totalorder %s1675_s14, 5 }
  0x30   : > { %p2229_p6 = scmp.ne.s32.totalorder (!%p1430_p2), %s2223_s19, 0 }
  0x31   : > { %154 = sbr.rel (%p1430_p2) target bundleno = 76 (0x4c), region = 20 }
  0x38   : > { %157 = sbr.rel (!%p2229_p6) target bundleno = 76 (0x4c), region = 24  ;;  %s159_s26 = sand.u32 (%p2229_p6), 1, %s1663_s11  }
  0x39   : > { %s1508_s29 = sshll.u32 (%p2229_p6), %s1671_s13, 7  ;;  %s1431_s30 = sshll.u32 (%p2229_p6), %s159_s26, 8 }
  0x3a   : > { %s1803_s5 = scalar_lea.vmem (%p2229_p6), %s2216_s0, %s1508_s29  ;;  %s1808_s19 = scalar_lea.vmem (%p2229_p6), [#allocation2], %s1431_s30 }
  0x3b   : > { %v257_v0 = vld [vmem:[%s1803_s5] sm:$0xff] (%p2229_p6)  ;;  %v259_v1 = vld [vmem:[%s1803_s5 + $0x8] sm:$0xff] (%p2229_p6)  ;;  %v261_v2 = vld [vmem:[%s1803_s5 + $0x10] sm:$0xff] (%p2229_p6) }
  0x3c   : > { %258 = vst [vmem:[%s1808_s19] sm:$0xff] (%p2229_p6), %v257_v0  ;;  %260 = vst [vmem:[%s1808_s19 + $0x8] sm:$0xff] (%p2229_p6), %v259_v1  ;;  %v263_v3 = vld [vmem:[%s1803_s5 + $0x18] sm:$0xff] (%p2229_p6)  ;;  %v265_v4 = vld [vmem:[%s1803_s5 + $0x20] sm:$0xff] (%p2229_p6) }
  0x3d   : > { %262 = vst [vmem:[%s1808_s19 + $0x10] sm:$0xff] (%p2229_p6), %v261_v2  ;;  %v267_v5 = vld [vmem:[%s1803_s5 + $0x28] sm:$0xff] (%p2229_p6)  ;;  %264 = vst [vmem:[%s1808_s19 + $0x18] sm:$0xff] (%p2229_p6), %v263_v3  ;;  %v269_v6 = vld [vmem:[%s1803_s5 + $0x30] sm:$0xff] (%p2229_p6) }
  0x3e   : > { %266 = vst [vmem:[%s1808_s19 + $0x20] sm:$0xff] (%p2229_p6), %v265_v4  ;;  %268 = vst [vmem:[%s1808_s19 + $0x28] sm:$0xff] (%p2229_p6), %v267_v5  ;;  %v271_v7 = vld [vmem:[%s1803_s5 + $0x38] sm:$0xff] (%p2229_p6)  ;;  %v273_v8 = vld [vmem:[%s1803_s5 + $0x40] sm:$0xff] (%p2229_p6) }
  0x3f   : > { %270 = vst [vmem:[%s1808_s19 + $0x30] sm:$0xff] %v269_v6  ;;  %272 = vst [vmem:[%s1808_s19 + $0x38] sm:$0xff] %v271_v7  ;;  %v275_v9 = vld [vmem:[%s1803_s5 + $0x48] sm:$0xff]  ;;  %v277_v10 = vld [vmem:[%s1803_s5 + $0x50] sm:$0xff] }
  0x40   : > { %274 = vst [vmem:[%s1808_s19 + $0x40] sm:$0xff] %v273_v8  ;;  %v279_v11 = vld [vmem:[%s1803_s5 + $0x58] sm:$0xff]  ;;  %276 = vst [vmem:[%s1808_s19 + $0x48] sm:$0xff] %v275_v9  ;;  %v281_v12 = vld [vmem:[%s1803_s5 + $0x60] sm:$0xff] }
  0x41   : > { %278 = vst [vmem:[%s1808_s19 + $0x50] sm:$0xff] %v277_v10  ;;  %280 = vst [vmem:[%s1808_s19 + $0x58] sm:$0xff] %v279_v11  ;;  %v283_v13 = vld [vmem:[%s1803_s5 + $0x68] sm:$0xff]  ;;  %v285_v14 = vld [vmem:[%s1803_s5 + $0x70] sm:$0xff] }
  0x42   : > { %282 = vst [vmem:[%s1808_s19 + $0x60] sm:$0xff] %v281_v12  ;;  %284 = vst [vmem:[%s1808_s19 + $0x68] sm:$0xff] %v283_v13  ;;  %v287_v15 = vld [vmem:[%s1803_s5 + $0x78] sm:$0xff]  ;;  %v289_v16 = vld [vmem:[%s1803_s5 + $0x280] sm:$0xff] }
  0x43   : > { %286 = vst [vmem:[%s1808_s19 + $0x70] sm:$0xff] %v285_v14  ;;  %v291_v17 = vld [vmem:[%s1803_s5 + $0x288] sm:$0xff]  ;;  %288 = vst [vmem:[%s1808_s19 + $0x78] sm:$0xff] %v287_v15  ;;  %v293_v18 = vld [vmem:[%s1803_s5 + $0x290] sm:$0xff] }
  0x44   : > { %290 = vst [vmem:[%s1808_s19 + $0x80] sm:$0xff] %v289_v16  ;;  %292 = vst [vmem:[%s1808_s19 + $0x88] sm:$0xff] %v291_v17  ;;  %v295_v19 = vld [vmem:[%s1803_s5 + $0x298] sm:$0xff]  ;;  %v297_v20 = vld [vmem:[%s1803_s5 + $0x2a0] sm:$0xff] }
  0x45   : > { %294 = vst [vmem:[%s1808_s19 + $0x90] sm:$0xff] %v293_v18  ;;  %296 = vst [vmem:[%s1808_s19 + $0x98] sm:$0xff] %v295_v19  ;;  %v299_v21 = vld [vmem:[%s1803_s5 + $0x2a8] sm:$0xff]  ;;  %v301_v22 = vld [vmem:[%s1803_s5 + $0x2b0] sm:$0xff] }
  0x46   : > { %298 = vst [vmem:[%s1808_s19 + $0xa0] sm:$0xff] %v297_v20  ;;  %v303_v23 = vld [vmem:[%s1803_s5 + $0x2b8] sm:$0xff]  ;;  %300 = vst [vmem:[%s1808_s19 + $0xa8] sm:$0xff] %v299_v21  ;;  %v305_v24 = vld [vmem:[%s1803_s5 + $0x2c0] sm:$0xff] }
  0x47   : > { %302 = vst [vmem:[%s1808_s19 + $0xb0] sm:$0xff] %v301_v22  ;;  %304 = vst [vmem:[%s1808_s19 + $0xb8] sm:$0xff] %v303_v23  ;;  %v307_v25 = vld [vmem:[%s1803_s5 + $0x2c8] sm:$0xff]  ;;  %v309_v26 = vld [vmem:[%s1803_s5 + $0x2d0] sm:$0xff] }
  0x48   : > { %306 = vst [vmem:[%s1808_s19 + $0xc0] sm:$0xff] %v305_v24  ;;  %308 = vst [vmem:[%s1808_s19 + $0xc8] sm:$0xff] %v307_v25  ;;  %v311_v27 = vld [vmem:[%s1803_s5 + $0x2d8] sm:$0xff]  ;;  %v313_v28 = vld [vmem:[%s1803_s5 + $0x2e0] sm:$0xff] }
  0x49   : > { %310 = vst [vmem:[%s1808_s19 + $0xd0] sm:$0xff] %v309_v26  ;;  %v315_v29 = vld [vmem:[%s1803_s5 + $0x2e8] sm:$0xff]  ;;  %312 = vst [vmem:[%s1808_s19 + $0xd8] sm:$0xff] %v311_v27  ;;  %v317_v30 = vld [vmem:[%s1803_s5 + $0x2f0] sm:$0xff] }
  0x4a   : > { %314 = vst [vmem:[%s1808_s19 + $0xe0] sm:$0xff] %v313_v28  ;;  %316 = vst [vmem:[%s1808_s19 + $0xe8] sm:$0xff] %v315_v29  ;;  %v319_v31 = vld [vmem:[%s1803_s5 + $0x2f8] sm:$0xff] }
  0x4b   : > { %318 = vst [vmem:[%s1808_s19 + $0xf0] sm:$0xff] %v317_v30  ;;  %320 = vst [vmem:[%s1808_s19 + $0xf8] sm:$0xff] %v319_v31 }
  0x4c PF: > { %p2230_p4 = scmp.ne.s32.totalorder %s2226_s24, 0 }
  0x4d   : > { %s1874_s27 = sand.u32 (!%p2230_p4), 1, %s1659_s10   ;;  %p2231_p5 = scmp.ne.s32.totalorder (!%p2230_p4), %s2227_s25, 0 }
  0x4e   : > { %329 = sbr.rel (%p2230_p4) target bundleno = 439 (0x1b7), region = 62  ;;  %s1435_s28 = sshll.u32 (!%p2230_p4), %s1874_s27, 8 }
  0x4f   : > { %s1877_s6 = scalar_lea.vmem (!%p2230_p4), [#allocation2], %s1435_s28 }
  0x55   : > { %1646 = dma.done.wait (%p2231_p5), [#allocation4], 1024  }
  0x56   : > { %1648 = vsyncadd (%p2231_p5), [#allocation4], 4294966272  ;;  %v1680_v32 = vmov 0.0   ;;  %v397_v33 = vld [vmem:[#allocation3 + $0x8] sm:$0xff]  ;;  %v399_v34 = vld [vmem:[#allocation3 + $0x18] sm:$0xff]  ;;  %vm404_vm0 = vcmask 64512  }
  0x57   : > { %517 = vmatprep.mubr.f32.mxu0 %v1680_v32  ;;  %678 = vmatprep.mubr.f32.mxu1 %v1680_v32  ;;  %v396_v35 = vld [vmem:[#allocation3] sm:$0xff]  ;;  %v398_v36 = vld [vmem:[#allocation3 + $0x10] sm:$0xff]  ;;  %v401_v38 = vld [vmem:[#allocation3 + $0x28] sm:$0xff]  ;;  %s1437_s24 = sshll.u32 %s1874_s27, 10  ;;  %s1274_s7 = scalar_lea.sflag [#allocation5], %s1874_s27 }
  0x58   : > { %453 = vmatprep.subr.mxu0 %v397_v33  ;;  %614 = vmatprep.subr.mxu1 %v399_v34  ;;  %v364_v37 = vld [vmem:[%s1877_s6] sm:$0xff]  ;;  %v403_v39 = vld [vmem:[#allocation3 + $0x38] sm:$0xff]  ;;  %v402_v41 = vld [vmem:[#allocation3 + $0x30] sm:$0xff]  ;;  %s2044_s25 = scalar_lea.vmem [#allocation6], %s1437_s24 }
  0x59   : > { %454 = vmatpush1.msra.mxu0 %v396_v35  ;;  %615 = vmatpush1.msra.mxu1 %v398_v36  ;;  %v400_v40 = vld [vmem:[#allocation3 + $0x20] sm:$0xff]  ;;  %v365_v42 = vld [vmem:[%s1877_s6 + $0x8] sm:$0xff]  ;;  %v366_v43 = vld [vmem:[%s1877_s6 + $0x10] sm:$0xff] }
  0x5a   : > { %1438 = vmatmul.mubr.msk.f32.vlgmr.msra.gmra.mrb[0].mxu0 %vm404_vm0, %v364_v37  ;;  %1454 = vmatmul.mubr.msk.f32.vlgmr.msra.gmra.mrb[0].mxu1 %vm404_vm0, %v364_v37  ;;  %v367_v44 = vld [vmem:[%s1877_s6 + $0x18] sm:$0xff]  ;;  %v368_v45 = vld [vmem:[%s1877_s6 + $0x20] sm:$0xff]  ;;  %v369_v46 = vld [vmem:[%s1877_s6 + $0x28] sm:$0xff] }
  0x5b   : > { %823 = vmatprep.subr.mxu0 %v401_v38  ;;  %984 = vmatprep.subr.mxu1 %v403_v39  ;;  %v370_v47 = vld [vmem:[%s1877_s6 + $0x30] sm:$0xff]  ;;  %v371_v48 = vld [vmem:[%s1877_s6 + $0x38] sm:$0xff]  ;;  %v372_v49 = vld [vmem:[%s1877_s6 + $0x40] sm:$0xff] }
  0x5c   : > { %824 = vmatpush1.msra.mxu0 %v400_v40  ;;  %985 = vmatpush1.msra.mxu1 %v402_v41  ;;  %v373_v50 = vld [vmem:[%s1877_s6 + $0x48] sm:$0xff]  ;;  %v374_v51 = vld [vmem:[%s1877_s6 + $0x50] sm:$0xff]  ;;  %v375_v52 = vld [vmem:[%s1877_s6 + $0x58] sm:$0xff] }
  0x5d   : > { %523 = vmatprep.mubr.f32.mxu0 %v1680_v32  ;;  %684 = vmatprep.mubr.f32.mxu1 %v1680_v32  ;;  %v376_v53 = vld [vmem:[%s1877_s6 + $0x60] sm:$0xff]  ;;  %v377_v54 = vld [vmem:[%s1877_s6 + $0x68] sm:$0xff]  ;;  %v378_v55 = vld [vmem:[%s1877_s6 + $0x70] sm:$0xff] }
  0x5e   : > { %1439 = vmatmul.mubr.msk.f32.gmra.mrb[2].mxu0 %vm404_vm0, %v365_v42  ;;  %1455 = vmatmul.mubr.msk.f32.gmra.mrb[2].mxu1 %vm404_vm0, %v365_v42  ;;  %v379_v56 = vld [vmem:[%s1877_s6 + $0x78] sm:$0xff]  ;;  %v380_v57 = vld [vmem:[%s1877_s6 + $0x80] sm:$0xff]  ;;  %v381_v58 = vld [vmem:[%s1877_s6 + $0x88] sm:$0xff] }
  0x5f   : > { %529 = vmatprep.mubr.f32.mxu0 %v1680_v32  ;;  %690 = vmatprep.mubr.f32.mxu1 %v1680_v32  ;;  %v382_v59 = vld [vmem:[%s1877_s6 + $0x90] sm:$0xff]  ;;  %v383_v60 = vld [vmem:[%s1877_s6 + $0x98] sm:$0xff]  ;;  %v384_v61 = vld [vmem:[%s1877_s6 + $0xa0] sm:$0xff] }
  0x60   : > { %v385_v62 = vld [vmem:[%s1877_s6 + $0xa8] sm:$0xff]  ;;  %v386_v63 = vld [vmem:[%s1877_s6 + $0xb0] sm:$0xff]  ;;  %v387_v0 = vld [vmem:[%s1877_s6 + $0xb8] sm:$0xff] }
  0x61   : > { %v388_v1 = vld [vmem:[%s1877_s6 + $0xc0] sm:$0xff]  ;;  %v389_v2 = vld [vmem:[%s1877_s6 + $0xc8] sm:$0xff]  ;;  %v390_v3 = vld [vmem:[%s1877_s6 + $0xd0] sm:$0xff] }
  0x62   : > { %1440 = vmatmul.mubr.msk.f32.gmra.mrb[4].mxu0 %vm404_vm0, %v366_v43  ;;  %1456 = vmatmul.mubr.msk.f32.gmra.mrb[4].mxu1 %vm404_vm0, %v366_v43  ;;  %v391_v4 = vld [vmem:[%s1877_s6 + $0xd8] sm:$0xff]  ;;  %v392_v5 = vld [vmem:[%s1877_s6 + $0xe0] sm:$0xff]  ;;  %v393_v6 = vld [vmem:[%s1877_s6 + $0xe8] sm:$0xff] }
  0x63   : > { %535 = vmatprep.mubr.f32.mxu0 %v1680_v32  ;;  %696 = vmatprep.mubr.f32.mxu1 %v1680_v32  ;;  %v394_v7 = vld [vmem:[%s1877_s6 + $0xf0] sm:$0xff]  ;;  %v395_v8 = vld [vmem:[%s1877_s6 + $0xf8] sm:$0xff] }
  0x66   : > { %1441 = vmatmul.mubr.msk.f32.gmra.mrb[6].mxu0 %vm404_vm0, %v367_v44  ;;  %1457 = vmatmul.mubr.msk.f32.gmra.mrb[6].mxu1 %vm404_vm0, %v367_v44 }
  0x67   : > { %541 = vmatprep.mubr.f32.mxu0 %v1680_v32  ;;  %702 = vmatprep.mubr.f32.mxu1 %v1680_v32 }
  0x6a   : > { %1442 = vmatmul.mubr.msk.f32.gmra.mrb[8].mxu0 %vm404_vm0, %v368_v45  ;;  %1458 = vmatmul.mubr.msk.f32.gmra.mrb[8].mxu1 %vm404_vm0, %v368_v45 }
  0x6b   : > { %547 = vmatprep.mubr.f32.mxu0 %v1680_v32  ;;  %708 = vmatprep.mubr.f32.mxu1 %v1680_v32 }
  0x6e   : > { %1443 = vmatmul.mubr.msk.f32.gmra.mrb[10].mxu0 %vm404_vm0, %v369_v46  ;;  %1459 = vmatmul.mubr.msk.f32.gmra.mrb[10].mxu1 %vm404_vm0, %v369_v46 }
  0x6f   : > { %553 = vmatprep.mubr.f32.mxu0 %v1680_v32  ;;  %714 = vmatprep.mubr.f32.mxu1 %v1680_v32 }
  0x72   : > { %1444 = vmatmul.mubr.msk.f32.gmra.mrb[12].mxu0 %vm404_vm0, %v370_v47  ;;  %1460 = vmatmul.mubr.msk.f32.gmra.mrb[12].mxu1 %vm404_vm0, %v370_v47 }
  0x73   : > { %559 = vmatprep.mubr.f32.mxu0 %v1680_v32  ;;  %720 = vmatprep.mubr.f32.mxu1 %v1680_v32 }
  0x76   : > { %1445 = vmatmul.mubr.msk.f32.gmra.mrb[14].mxu0 %vm404_vm0, %v371_v48  ;;  %1461 = vmatmul.mubr.msk.f32.gmra.mrb[14].mxu1 %vm404_vm0, %v371_v48 }
  0x77   : > { %565 = vmatprep.mubr.f32.mxu0 %v1680_v32  ;;  %726 = vmatprep.mubr.f32.mxu1 %v1680_v32 }
  0x7a   : > { %1446 = vmatmul.mubr.msk.f32.gmra.mrb[16].mxu0 %vm404_vm0, %v372_v49  ;;  %1462 = vmatmul.mubr.msk.f32.gmra.mrb[16].mxu1 %vm404_vm0, %v372_v49 }
  0x7b   : > { %571 = vmatprep.mubr.f32.mxu0 %v1680_v32  ;;  %732 = vmatprep.mubr.f32.mxu1 %v1680_v32 }
  0x7e   : > { %1447 = vmatmul.mubr.msk.f32.gmra.mrb[18].mxu0 %vm404_vm0, %v373_v50  ;;  %1463 = vmatmul.mubr.msk.f32.gmra.mrb[18].mxu1 %vm404_vm0, %v373_v50 }
  0x7f   : > { %577 = vmatprep.mubr.f32.mxu0 %v1680_v32  ;;  %738 = vmatprep.mubr.f32.mxu1 %v1680_v32 }
  0x82   : > { %1448 = vmatmul.mubr.msk.f32.gmra.mrb[20].mxu0 %vm404_vm0, %v374_v51  ;;  %1464 = vmatmul.mubr.msk.f32.gmra.mrb[20].mxu1 %vm404_vm0, %v374_v51 }
  0x83   : > { %583 = vmatprep.mubr.f32.mxu0 %v1680_v32  ;;  %744 = vmatprep.mubr.f32.mxu1 %v1680_v32 }
  0x86   : > { %1449 = vmatmul.mubr.msk.f32.gmra.mrb[22].mxu0 %vm404_vm0, %v375_v52  ;;  %1465 = vmatmul.mubr.msk.f32.gmra.mrb[22].mxu1 %vm404_vm0, %v375_v52 }
  0x87   : > { %589 = vmatprep.mubr.f32.mxu0 %v1680_v32  ;;  %750 = vmatprep.mubr.f32.mxu1 %v1680_v32 }
  0x8a   : > { %1450 = vmatmul.mubr.msk.f32.gmra.mrb[24].mxu0 %vm404_vm0, %v376_v53  ;;  %1466 = vmatmul.mubr.msk.f32.gmra.mrb[24].mxu1 %vm404_vm0, %v376_v53 }
  0x8b   : > { %595 = vmatprep.mubr.f32.mxu0 %v1680_v32  ;;  %756 = vmatprep.mubr.f32.mxu1 %v1680_v32 }
  0x8e   : > { %1451 = vmatmul.mubr.msk.f32.gmra.mrb[26].mxu0 %vm404_vm0, %v377_v54  ;;  %1467 = vmatmul.mubr.msk.f32.gmra.mrb[26].mxu1 %vm404_vm0, %v377_v54 }
  0x8f   : > { %601 = vmatprep.mubr.f32.mxu0 %v1680_v32  ;;  %762 = vmatprep.mubr.f32.mxu1 %v1680_v32 }
  0x92   : > { %1452 = vmatmul.mubr.msk.f32.gmra.mrb[28].mxu0 %vm404_vm0, %v378_v55  ;;  %1468 = vmatmul.mubr.msk.f32.gmra.mrb[28].mxu1 %vm404_vm0, %v378_v55 }
  0x93   : > { %607 = vmatprep.mubr.f32.mxu0 %v1680_v32  ;;  %768 = vmatprep.mubr.f32.mxu1 %v1680_v32 }
  0x96   : > { %1453 = vmatmul.mubr.msk.f32.gmra.mrb[30].mxu0 %vm404_vm0, %v379_v56  ;;  %1469 = vmatmul.mubr.msk.f32.gmra.mrb[30].mxu1 %vm404_vm0, %v379_v56 }
  0x97   : > { %887 = vmatprep.mubr.f32.mxu0 %v1680_v32  ;;  %1048 = vmatprep.mubr.f32.mxu1 %v1680_v32 }
  0x9a   : > { %1470 = vmatmul.mubr.msk.f32.vlgmr.msra.gmra.mrb[32].mxu0 %vm404_vm0, %v380_v57  ;;  %1486 = vmatmul.mubr.msk.f32.vlgmr.msra.gmra.mrb[32].mxu1 %vm404_vm0, %v380_v57 }
  0x9b   : > { %893 = vmatprep.mubr.f32.mxu0 %v1680_v32  ;;  %1054 = vmatprep.mubr.f32.mxu1 %v1680_v32 }
  0x9e   : > { %1471 = vmatmul.mubr.msk.f32.gmra.mrb[34].mxu0 %vm404_vm0, %v381_v58  ;;  %1487 = vmatmul.mubr.msk.f32.gmra.mrb[34].mxu1 %vm404_vm0, %v381_v58 }
  0x9f   : > { %899 = vmatprep.mubr.f32.mxu0 %v1680_v32  ;;  %1060 = vmatprep.mubr.f32.mxu1 %v1680_v32 }
  0xa2   : > { %1472 = vmatmul.mubr.msk.f32.gmra.mrb[36].mxu0 %vm404_vm0, %v382_v59  ;;  %1488 = vmatmul.mubr.msk.f32.gmra.mrb[36].mxu1 %vm404_vm0, %v382_v59 }
  0xa3   : > { %905 = vmatprep.mubr.f32.mxu0 %v1680_v32  ;;  %1066 = vmatprep.mubr.f32.mxu1 %v1680_v32 }
  0xa6   : > { %1473 = vmatmul.mubr.msk.f32.gmra.mrb[38].mxu0 %vm404_vm0, %v383_v60  ;;  %1489 = vmatmul.mubr.msk.f32.gmra.mrb[38].mxu1 %vm404_vm0, %v383_v60 }
  0xa7   : > { %911 = vmatprep.mubr.f32.mxu0 %v1680_v32  ;;  %1072 = vmatprep.mubr.f32.mxu1 %v1680_v32 }
  0xaa   : > { %1474 = vmatmul.mubr.msk.f32.gmra.mrb[40].mxu0 %vm404_vm0, %v384_v61  ;;  %1490 = vmatmul.mubr.msk.f32.gmra.mrb[40].mxu1 %vm404_vm0, %v384_v61 }
  0xab   : > { %917 = vmatprep.mubr.f32.mxu0 %v1680_v32  ;;  %1078 = vmatprep.mubr.f32.mxu1 %v1680_v32 }
  0xae   : > { %1475 = vmatmul.mubr.msk.f32.gmra.mrb[42].mxu0 %vm404_vm0, %v385_v62  ;;  %1491 = vmatmul.mubr.msk.f32.gmra.mrb[42].mxu1 %vm404_vm0, %v385_v62 }
  0xaf   : > { %923 = vmatprep.mubr.f32.mxu0 %v1680_v32  ;;  %1084 = vmatprep.mubr.f32.mxu1 %v1680_v32 }
  0xb2   : > { %1476 = vmatmul.mubr.msk.f32.gmra.mrb[44].mxu0 %vm404_vm0, %v386_v63  ;;  %1492 = vmatmul.mubr.msk.f32.gmra.mrb[44].mxu1 %vm404_vm0, %v386_v63 }
  0xb3   : > { %929 = vmatprep.mubr.f32.mxu0 %v1680_v32  ;;  %1090 = vmatprep.mubr.f32.mxu1 %v1680_v32 }
  0xb6   : > { %1477 = vmatmul.mubr.msk.f32.gmra.mrb[46].mxu0 %vm404_vm0, %v387_v0  ;;  %1493 = vmatmul.mubr.msk.f32.gmra.mrb[46].mxu1 %vm404_vm0, %v387_v0 }
  0xb7   : > { %935 = vmatprep.mubr.f32.mxu0 %v1680_v32  ;;  %1096 = vmatprep.mubr.f32.mxu1 %v1680_v32 }
  0xba   : > { %1478 = vmatmul.mubr.msk.f32.gmra.mrb[48].mxu0 %vm404_vm0, %v388_v1  ;;  %1494 = vmatmul.mubr.msk.f32.gmra.mrb[48].mxu1 %vm404_vm0, %v388_v1 }
  0xbb   : > { %941 = vmatprep.mubr.f32.mxu0 %v1680_v32  ;;  %1102 = vmatprep.mubr.f32.mxu1 %v1680_v32 }
  0xbe   : > { %1479 = vmatmul.mubr.msk.f32.gmra.mrb[50].mxu0 %vm404_vm0, %v389_v2  ;;  %1495 = vmatmul.mubr.msk.f32.gmra.mrb[50].mxu1 %vm404_vm0, %v389_v2 }
  0xbf   : > { %947 = vmatprep.mubr.f32.mxu0 %v1680_v32  ;;  %1108 = vmatprep.mubr.f32.mxu1 %v1680_v32 }
  0xc2   : > { %1480 = vmatmul.mubr.msk.f32.gmra.mrb[52].mxu0 %vm404_vm0, %v390_v3  ;;  %1496 = vmatmul.mubr.msk.f32.gmra.mrb[52].mxu1 %vm404_vm0, %v390_v3 }
  0xc3   : > { %953 = vmatprep.mubr.f32.mxu0 %v1680_v32  ;;  %1114 = vmatprep.mubr.f32.mxu1 %v1680_v32 }
  0xc6   : > { %1481 = vmatmul.mubr.msk.f32.gmra.mrb[54].mxu0 %vm404_vm0, %v391_v4  ;;  %1497 = vmatmul.mubr.msk.f32.gmra.mrb[54].mxu1 %vm404_vm0, %v391_v4 }
  0xc7   : > { %959 = vmatprep.mubr.f32.mxu0 %v1680_v32  ;;  %1120 = vmatprep.mubr.f32.mxu1 %v1680_v32 }
  0xca   : > { %1482 = vmatmul.mubr.msk.f32.gmra.mrb[56].mxu0 %vm404_vm0, %v392_v5  ;;  %1498 = vmatmul.mubr.msk.f32.gmra.mrb[56].mxu1 %vm404_vm0, %v392_v5 }
  0xcb   : > { %965 = vmatprep.mubr.f32.mxu0 %v1680_v32  ;;  %1126 = vmatprep.mubr.f32.mxu1 %v1680_v32 }
  0xce   : > { %1483 = vmatmul.mubr.msk.f32.gmra.mrb[58].mxu0 %vm404_vm0, %v393_v6  ;;  %1499 = vmatmul.mubr.msk.f32.gmra.mrb[58].mxu1 %vm404_vm0, %v393_v6 }
  0xcf   : > { %971 = vmatprep.mubr.f32.mxu0 %v1680_v32  ;;  %1132 = vmatprep.mubr.f32.mxu1 %v1680_v32 }
  0xd2   : > { %1484 = vmatmul.mubr.msk.f32.gmra.mrb[60].mxu0 %vm404_vm0, %v394_v7  ;;  %1500 = vmatmul.mubr.msk.f32.gmra.mrb[60].mxu1 %vm404_vm0, %v394_v7 }
  0xd3   : > { %977 = vmatprep.mubr.f32.mxu0 %v1680_v32  ;;  %1138 = vmatprep.mubr.f32.mxu1 %v1680_v32 }
  0xd6   : > { %1485 = vmatmul.mubr.msk.f32.gmra.mrb[62].mxu0 %vm404_vm0, %v395_v8  ;;  %1501 = vmatmul.mubr.msk.f32.gmra.mrb[62].mxu1 %vm404_vm0, %v395_v8 }
 0x12d   : > { %v519_v9 = vpop.f32.mrb[0].mxu0  ;;  %v680_v10 = vpop.f32.mrb[0].mxu1 }
 0x12e   : > { %1145 = vst [vmem:[%s2044_s25] sm:$0xff] %v519_v9  ;;  %1147 = vst [vmem:[%s2044_s25 + $0x10] sm:$0xff] %v680_v10  ;;  %v521_v11 = vpop.f32.mrb[1].mxu0  ;;  %v682_v12 = vpop.f32.mrb[1].mxu1 }
 0x12f   : > { %1146 = vst [vmem:[%s2044_s25 + $0x8] sm:$0xff] %v521_v11  ;;  %1148 = vst [vmem:[%s2044_s25 + $0x18] sm:$0xff] %v682_v12 }
 0x131   : > { %v525_v13 = vpop.f32.mrb[2].mxu0  ;;  %v686_v14 = vpop.f32.mrb[2].mxu1 }
 0x132   : > { %1149 = vst [vmem:[%s2044_s25 + $0x20] sm:$0xff] %v525_v13  ;;  %1151 = vst [vmem:[%s2044_s25 + $0x30] sm:$0xff] %v686_v14  ;;  %v527_v15 = vpop.f32.mrb[3].mxu0  ;;  %v688_v16 = vpop.f32.mrb[3].mxu1 }
 0x133   : > { %1150 = vst [vmem:[%s2044_s25 + $0x28] sm:$0xff] %v527_v15  ;;  %1152 = vst [vmem:[%s2044_s25 + $0x38] sm:$0xff] %v688_v16 }
 0x135   : > { %v531_v17 = vpop.f32.mrb[4].mxu0  ;;  %v692_v18 = vpop.f32.mrb[4].mxu1 }
 0x136   : > { %1153 = vst [vmem:[%s2044_s25 + $0x40] sm:$0xff] %v531_v17  ;;  %1155 = vst [vmem:[%s2044_s25 + $0x50] sm:$0xff] %v692_v18  ;;  %v533_v19 = vpop.f32.mrb[5].mxu0  ;;  %v694_v20 = vpop.f32.mrb[5].mxu1 }
 0x137   : > { %1154 = vst [vmem:[%s2044_s25 + $0x48] sm:$0xff] %v533_v19  ;;  %1156 = vst [vmem:[%s2044_s25 + $0x58] sm:$0xff] %v694_v20 }
 0x139   : > { %v537_v21 = vpop.f32.mrb[6].mxu0  ;;  %v698_v22 = vpop.f32.mrb[6].mxu1 }
 0x13a   : > { %1157 = vst [vmem:[%s2044_s25 + $0x60] sm:$0xff] %v537_v21  ;;  %1159 = vst [vmem:[%s2044_s25 + $0x70] sm:$0xff] %v698_v22  ;;  %v539_v23 = vpop.f32.mrb[7].mxu0  ;;  %v700_v24 = vpop.f32.mrb[7].mxu1 }
 0x13b   : > { %1158 = vst [vmem:[%s2044_s25 + $0x68] sm:$0xff] %v539_v23  ;;  %1160 = vst [vmem:[%s2044_s25 + $0x78] sm:$0xff] %v700_v24 }
 0x13d   : > { %v543_v25 = vpop.f32.mrb[8].mxu0  ;;  %v704_v26 = vpop.f32.mrb[8].mxu1 }
 0x13e   : > { %1161 = vst [vmem:[%s2044_s25 + $0x80] sm:$0xff] %v543_v25  ;;  %1163 = vst [vmem:[%s2044_s25 + $0x90] sm:$0xff] %v704_v26  ;;  %v545_v27 = vpop.f32.mrb[9].mxu0  ;;  %v706_v28 = vpop.f32.mrb[9].mxu1 }
 0x13f   : > { %1162 = vst [vmem:[%s2044_s25 + $0x88] sm:$0xff] %v545_v27  ;;  %1164 = vst [vmem:[%s2044_s25 + $0x98] sm:$0xff] %v706_v28 }
 0x141   : > { %v549_v29 = vpop.f32.mrb[10].mxu0  ;;  %v710_v30 = vpop.f32.mrb[10].mxu1 }
 0x142   : > { %1165 = vst [vmem:[%s2044_s25 + $0xa0] sm:$0xff] %v549_v29  ;;  %1167 = vst [vmem:[%s2044_s25 + $0xb0] sm:$0xff] %v710_v30  ;;  %v551_v31 = vpop.f32.mrb[11].mxu0  ;;  %v712_v32 = vpop.f32.mrb[11].mxu1 }
 0x143   : > { %1166 = vst [vmem:[%s2044_s25 + $0xa8] sm:$0xff] %v551_v31  ;;  %1168 = vst [vmem:[%s2044_s25 + $0xb8] sm:$0xff] %v712_v32 }
 0x145   : > { %v555_v33 = vpop.f32.mrb[12].mxu0  ;;  %v716_v34 = vpop.f32.mrb[12].mxu1 }
 0x146   : > { %1169 = vst [vmem:[%s2044_s25 + $0xc0] sm:$0xff] %v555_v33  ;;  %1171 = vst [vmem:[%s2044_s25 + $0xd0] sm:$0xff] %v716_v34  ;;  %v557_v35 = vpop.f32.mrb[13].mxu0  ;;  %v718_v36 = vpop.f32.mrb[13].mxu1 }
 0x147   : > { %1170 = vst [vmem:[%s2044_s25 + $0xc8] sm:$0xff] %v557_v35  ;;  %1172 = vst [vmem:[%s2044_s25 + $0xd8] sm:$0xff] %v718_v36 }
 0x149   : > { %v561_v37 = vpop.f32.mrb[14].mxu0  ;;  %v722_v38 = vpop.f32.mrb[14].mxu1 }
 0x14a   : > { %1173 = vst [vmem:[%s2044_s25 + $0xe0] sm:$0xff] %v561_v37  ;;  %1175 = vst [vmem:[%s2044_s25 + $0xf0] sm:$0xff] %v722_v38  ;;  %v563_v39 = vpop.f32.mrb[15].mxu0  ;;  %v724_v40 = vpop.f32.mrb[15].mxu1 }
 0x14b   : > { %1174 = vst [vmem:[%s2044_s25 + $0xe8] sm:$0xff] %v563_v39  ;;  %1176 = vst [vmem:[%s2044_s25 + $0xf8] sm:$0xff] %v724_v40 }
 0x14d   : > { %v567_v41 = vpop.f32.mrb[16].mxu0  ;;  %v728_v42 = vpop.f32.mrb[16].mxu1 }
 0x14e   : > { %1177 = vst [vmem:[%s2044_s25 + $0x100] sm:$0xff] %v567_v41  ;;  %1179 = vst [vmem:[%s2044_s25 + $0x110] sm:$0xff] %v728_v42  ;;  %v569_v43 = vpop.f32.mrb[17].mxu0  ;;  %v730_v44 = vpop.f32.mrb[17].mxu1 }
 0x14f   : > { %1178 = vst [vmem:[%s2044_s25 + $0x108] sm:$0xff] %v569_v43  ;;  %1180 = vst [vmem:[%s2044_s25 + $0x118] sm:$0xff] %v730_v44 }
 0x151   : > { %v573_v45 = vpop.f32.mrb[18].mxu0  ;;  %v734_v46 = vpop.f32.mrb[18].mxu1 }
 0x152   : > { %1181 = vst [vmem:[%s2044_s25 + $0x120] sm:$0xff] %v573_v45  ;;  %1183 = vst [vmem:[%s2044_s25 + $0x130] sm:$0xff] %v734_v46  ;;  %v575_v47 = vpop.f32.mrb[19].mxu0  ;;  %v736_v48 = vpop.f32.mrb[19].mxu1 }
 0x153   : > { %1182 = vst [vmem:[%s2044_s25 + $0x128] sm:$0xff] %v575_v47  ;;  %1184 = vst [vmem:[%s2044_s25 + $0x138] sm:$0xff] %v736_v48 }
 0x155   : > { %v579_v49 = vpop.f32.mrb[20].mxu0  ;;  %v740_v50 = vpop.f32.mrb[20].mxu1 }
 0x156   : > { %1185 = vst [vmem:[%s2044_s25 + $0x140] sm:$0xff] %v579_v49  ;;  %1187 = vst [vmem:[%s2044_s25 + $0x150] sm:$0xff] %v740_v50  ;;  %v581_v51 = vpop.f32.mrb[21].mxu0  ;;  %v742_v52 = vpop.f32.mrb[21].mxu1 }
 0x157   : > { %1186 = vst [vmem:[%s2044_s25 + $0x148] sm:$0xff] %v581_v51  ;;  %1188 = vst [vmem:[%s2044_s25 + $0x158] sm:$0xff] %v742_v52 }
 0x159   : > { %v585_v53 = vpop.f32.mrb[22].mxu0  ;;  %v746_v54 = vpop.f32.mrb[22].mxu1 }
 0x15a   : > { %1189 = vst [vmem:[%s2044_s25 + $0x160] sm:$0xff] %v585_v53  ;;  %1191 = vst [vmem:[%s2044_s25 + $0x170] sm:$0xff] %v746_v54  ;;  %v587_v55 = vpop.f32.mrb[23].mxu0  ;;  %v748_v56 = vpop.f32.mrb[23].mxu1 }
 0x15b   : > { %1190 = vst [vmem:[%s2044_s25 + $0x168] sm:$0xff] %v587_v55  ;;  %1192 = vst [vmem:[%s2044_s25 + $0x178] sm:$0xff] %v748_v56 }
 0x15d   : > { %v591_v57 = vpop.f32.mrb[24].mxu0  ;;  %v752_v58 = vpop.f32.mrb[24].mxu1 }
 0x15e   : > { %1193 = vst [vmem:[%s2044_s25 + $0x180] sm:$0xff] %v591_v57  ;;  %1195 = vst [vmem:[%s2044_s25 + $0x190] sm:$0xff] %v752_v58  ;;  %v593_v59 = vpop.f32.mrb[25].mxu0  ;;  %v754_v60 = vpop.f32.mrb[25].mxu1 }
 0x15f   : > { %1194 = vst [vmem:[%s2044_s25 + $0x188] sm:$0xff] %v593_v59  ;;  %1196 = vst [vmem:[%s2044_s25 + $0x198] sm:$0xff] %v754_v60 }
 0x161   : > { %v597_v61 = vpop.f32.mrb[26].mxu0  ;;  %v758_v62 = vpop.f32.mrb[26].mxu1 }
 0x162   : > { %1197 = vst [vmem:[%s2044_s25 + $0x1a0] sm:$0xff] %v597_v61  ;;  %1199 = vst [vmem:[%s2044_s25 + $0x1b0] sm:$0xff] %v758_v62  ;;  %v599_v63 = vpop.f32.mrb[27].mxu0  ;;  %v760_v0 = vpop.f32.mrb[27].mxu1 }
 0x163   : > { %1198 = vst [vmem:[%s2044_s25 + $0x1a8] sm:$0xff] %v599_v63  ;;  %1200 = vst [vmem:[%s2044_s25 + $0x1b8] sm:$0xff] %v760_v0 }
 0x165   : > { %v603_v1 = vpop.f32.mrb[28].mxu0  ;;  %v764_v2 = vpop.f32.mrb[28].mxu1 }
 0x166   : > { %1201 = vst [vmem:[%s2044_s25 + $0x1c0] sm:$0xff] %v603_v1  ;;  %1203 = vst [vmem:[%s2044_s25 + $0x1d0] sm:$0xff] %v764_v2  ;;  %v605_v3 = vpop.f32.mrb[29].mxu0  ;;  %v766_v4 = vpop.f32.mrb[29].mxu1 }
 0x167   : > { %1202 = vst [vmem:[%s2044_s25 + $0x1c8] sm:$0xff] %v605_v3  ;;  %1204 = vst [vmem:[%s2044_s25 + $0x1d8] sm:$0xff] %v766_v4 }
 0x169   : > { %v609_v5 = vpop.f32.mrb[30].mxu0  ;;  %v770_v6 = vpop.f32.mrb[30].mxu1 }
 0x16a   : > { %1205 = vst [vmem:[%s2044_s25 + $0x1e0] sm:$0xff] %v609_v5  ;;  %1207 = vst [vmem:[%s2044_s25 + $0x1f0] sm:$0xff] %v770_v6  ;;  %v611_v7 = vpop.f32.mrb[31].mxu0  ;;  %v772_v8 = vpop.f32.mrb[31].mxu1 }
 0x16b   : > { %1206 = vst [vmem:[%s2044_s25 + $0x1e8] sm:$0xff] %v611_v7  ;;  %1208 = vst [vmem:[%s2044_s25 + $0x1f8] sm:$0xff] %v772_v8 }
 0x16d   : > { %v889_v9 = vpop.f32.mrb[32].mxu0  ;;  %v1050_v10 = vpop.f32.mrb[32].mxu1 }
 0x16e   : > { %1209 = vst [vmem:[%s2044_s25 + $0x200] sm:$0xff] %v889_v9  ;;  %1211 = vst [vmem:[%s2044_s25 + $0x210] sm:$0xff] %v1050_v10  ;;  %v891_v11 = vpop.f32.mrb[33].mxu0  ;;  %v1052_v12 = vpop.f32.mrb[33].mxu1 }
 0x16f   : > { %1210 = vst [vmem:[%s2044_s25 + $0x208] sm:$0xff] %v891_v11  ;;  %1212 = vst [vmem:[%s2044_s25 + $0x218] sm:$0xff] %v1052_v12 }
 0x171   : > { %v895_v13 = vpop.f32.mrb[34].mxu0  ;;  %v1056_v14 = vpop.f32.mrb[34].mxu1 }
 0x172   : > { %1213 = vst [vmem:[%s2044_s25 + $0x220] sm:$0xff] %v895_v13  ;;  %1215 = vst [vmem:[%s2044_s25 + $0x230] sm:$0xff] %v1056_v14  ;;  %v897_v15 = vpop.f32.mrb[35].mxu0  ;;  %v1058_v16 = vpop.f32.mrb[35].mxu1 }
 0x173   : > { %1214 = vst [vmem:[%s2044_s25 + $0x228] sm:$0xff] %v897_v15  ;;  %1216 = vst [vmem:[%s2044_s25 + $0x238] sm:$0xff] %v1058_v16 }
 0x175   : > { %v901_v17 = vpop.f32.mrb[36].mxu0  ;;  %v1062_v18 = vpop.f32.mrb[36].mxu1 }
 0x176   : > { %1217 = vst [vmem:[%s2044_s25 + $0x240] sm:$0xff] %v901_v17  ;;  %1219 = vst [vmem:[%s2044_s25 + $0x250] sm:$0xff] %v1062_v18  ;;  %v903_v19 = vpop.f32.mrb[37].mxu0  ;;  %v1064_v20 = vpop.f32.mrb[37].mxu1 }
 0x177   : > { %1218 = vst [vmem:[%s2044_s25 + $0x248] sm:$0xff] %v903_v19  ;;  %1220 = vst [vmem:[%s2044_s25 + $0x258] sm:$0xff] %v1064_v20 }
 0x179   : > { %v907_v21 = vpop.f32.mrb[38].mxu0  ;;  %v1068_v22 = vpop.f32.mrb[38].mxu1 }
 0x17a   : > { %1221 = vst [vmem:[%s2044_s25 + $0x260] sm:$0xff] %v907_v21  ;;  %1223 = vst [vmem:[%s2044_s25 + $0x270] sm:$0xff] %v1068_v22  ;;  %v909_v23 = vpop.f32.mrb[39].mxu0  ;;  %v1070_v24 = vpop.f32.mrb[39].mxu1 }
 0x17b   : > { %1222 = vst [vmem:[%s2044_s25 + $0x268] sm:$0xff] %v909_v23  ;;  %1224 = vst [vmem:[%s2044_s25 + $0x278] sm:$0xff] %v1070_v24 }
 0x17d   : > { %v913_v25 = vpop.f32.mrb[40].mxu0  ;;  %v1074_v26 = vpop.f32.mrb[40].mxu1 }
 0x17e   : > { %1225 = vst [vmem:[%s2044_s25 + $0x280] sm:$0xff] %v913_v25  ;;  %1227 = vst [vmem:[%s2044_s25 + $0x290] sm:$0xff] %v1074_v26  ;;  %v915_v27 = vpop.f32.mrb[41].mxu0  ;;  %v1076_v28 = vpop.f32.mrb[41].mxu1 }
 0x17f   : > { %1226 = vst [vmem:[%s2044_s25 + $0x288] sm:$0xff] %v915_v27  ;;  %1228 = vst [vmem:[%s2044_s25 + $0x298] sm:$0xff] %v1076_v28 }
 0x181   : > { %v919_v29 = vpop.f32.mrb[42].mxu0  ;;  %v1080_v30 = vpop.f32.mrb[42].mxu1 }
 0x182   : > { %1229 = vst [vmem:[%s2044_s25 + $0x2a0] sm:$0xff] %v919_v29  ;;  %1231 = vst [vmem:[%s2044_s25 + $0x2b0] sm:$0xff] %v1080_v30  ;;  %v921_v31 = vpop.f32.mrb[43].mxu0  ;;  %v1082_v32 = vpop.f32.mrb[43].mxu1 }
 0x183   : > { %1230 = vst [vmem:[%s2044_s25 + $0x2a8] sm:$0xff] %v921_v31  ;;  %1232 = vst [vmem:[%s2044_s25 + $0x2b8] sm:$0xff] %v1082_v32 }
 0x185   : > { %v925_v33 = vpop.f32.mrb[44].mxu0  ;;  %v1086_v34 = vpop.f32.mrb[44].mxu1 }
 0x186   : > { %1233 = vst [vmem:[%s2044_s25 + $0x2c0] sm:$0xff] %v925_v33  ;;  %1235 = vst [vmem:[%s2044_s25 + $0x2d0] sm:$0xff] %v1086_v34  ;;  %v927_v35 = vpop.f32.mrb[45].mxu0  ;;  %v1088_v36 = vpop.f32.mrb[45].mxu1 }
 0x187   : > { %1234 = vst [vmem:[%s2044_s25 + $0x2c8] sm:$0xff] %v927_v35  ;;  %1236 = vst [vmem:[%s2044_s25 + $0x2d8] sm:$0xff] %v1088_v36 }
 0x189   : > { %v931_v37 = vpop.f32.mrb[46].mxu0  ;;  %v1092_v38 = vpop.f32.mrb[46].mxu1 }
 0x18a   : > { %1237 = vst [vmem:[%s2044_s25 + $0x2e0] sm:$0xff] %v931_v37  ;;  %1239 = vst [vmem:[%s2044_s25 + $0x2f0] sm:$0xff] %v1092_v38  ;;  %v933_v39 = vpop.f32.mrb[47].mxu0  ;;  %v1094_v40 = vpop.f32.mrb[47].mxu1 }
 0x18b   : > { %1238 = vst [vmem:[%s2044_s25 + $0x2e8] sm:$0xff] %v933_v39  ;;  %1240 = vst [vmem:[%s2044_s25 + $0x2f8] sm:$0xff] %v1094_v40 }
 0x18d   : > { %v937_v41 = vpop.f32.mrb[48].mxu0  ;;  %v1098_v42 = vpop.f32.mrb[48].mxu1 }
 0x18e   : > { %1241 = vst [vmem:[%s2044_s25 + $0x300] sm:$0xff] %v937_v41  ;;  %1243 = vst [vmem:[%s2044_s25 + $0x310] sm:$0xff] %v1098_v42  ;;  %v939_v43 = vpop.f32.mrb[49].mxu0  ;;  %v1100_v44 = vpop.f32.mrb[49].mxu1 }
 0x18f   : > { %1242 = vst [vmem:[%s2044_s25 + $0x308] sm:$0xff] %v939_v43  ;;  %1244 = vst [vmem:[%s2044_s25 + $0x318] sm:$0xff] %v1100_v44 }
 0x191   : > { %v943_v45 = vpop.f32.mrb[50].mxu0  ;;  %v1104_v46 = vpop.f32.mrb[50].mxu1 }
 0x192   : > { %1245 = vst [vmem:[%s2044_s25 + $0x320] sm:$0xff] %v943_v45  ;;  %1247 = vst [vmem:[%s2044_s25 + $0x330] sm:$0xff] %v1104_v46  ;;  %v945_v47 = vpop.f32.mrb[51].mxu0  ;;  %v1106_v48 = vpop.f32.mrb[51].mxu1 }
 0x193   : > { %1246 = vst [vmem:[%s2044_s25 + $0x328] sm:$0xff] %v945_v47  ;;  %1248 = vst [vmem:[%s2044_s25 + $0x338] sm:$0xff] %v1106_v48 }
 0x195   : > { %v949_v49 = vpop.f32.mrb[52].mxu0  ;;  %v1110_v50 = vpop.f32.mrb[52].mxu1 }
 0x196   : > { %1249 = vst [vmem:[%s2044_s25 + $0x340] sm:$0xff] %v949_v49  ;;  %1251 = vst [vmem:[%s2044_s25 + $0x350] sm:$0xff] %v1110_v50  ;;  %v951_v51 = vpop.f32.mrb[53].mxu0  ;;  %v1112_v52 = vpop.f32.mrb[53].mxu1 }
 0x197   : > { %1250 = vst [vmem:[%s2044_s25 + $0x348] sm:$0xff] %v951_v51  ;;  %1252 = vst [vmem:[%s2044_s25 + $0x358] sm:$0xff] %v1112_v52 }
 0x199   : > { %v955_v53 = vpop.f32.mrb[54].mxu0  ;;  %v1116_v54 = vpop.f32.mrb[54].mxu1 }
 0x19a   : > { %1253 = vst [vmem:[%s2044_s25 + $0x360] sm:$0xff] %v955_v53  ;;  %1255 = vst [vmem:[%s2044_s25 + $0x370] sm:$0xff] %v1116_v54  ;;  %v957_v55 = vpop.f32.mrb[55].mxu0  ;;  %v1118_v56 = vpop.f32.mrb[55].mxu1 }
 0x19b   : > { %1254 = vst [vmem:[%s2044_s25 + $0x368] sm:$0xff] %v957_v55  ;;  %1256 = vst [vmem:[%s2044_s25 + $0x378] sm:$0xff] %v1118_v56 }
 0x19d   : > { %v961_v57 = vpop.f32.mrb[56].mxu0  ;;  %v1122_v58 = vpop.f32.mrb[56].mxu1 }
 0x19e   : > { %1257 = vst [vmem:[%s2044_s25 + $0x380] sm:$0xff] %v961_v57  ;;  %1259 = vst [vmem:[%s2044_s25 + $0x390] sm:$0xff] %v1122_v58  ;;  %v963_v59 = vpop.f32.mrb[57].mxu0  ;;  %v1124_v60 = vpop.f32.mrb[57].mxu1 }
 0x19f   : > { %1258 = vst [vmem:[%s2044_s25 + $0x388] sm:$0xff] %v963_v59  ;;  %1260 = vst [vmem:[%s2044_s25 + $0x398] sm:$0xff] %v1124_v60 }
 0x1a1   : > { %v967_v61 = vpop.f32.mrb[58].mxu0  ;;  %v1128_v62 = vpop.f32.mrb[58].mxu1 }
 0x1a2   : > { %1261 = vst [vmem:[%s2044_s25 + $0x3a0] sm:$0xff] %v967_v61  ;;  %1263 = vst [vmem:[%s2044_s25 + $0x3b0] sm:$0xff] %v1128_v62  ;;  %v969_v63 = vpop.f32.mrb[59].mxu0  ;;  %v1130_v0 = vpop.f32.mrb[59].mxu1 }
 0x1a3   : > { %1262 = vst [vmem:[%s2044_s25 + $0x3a8] sm:$0xff] %v969_v63  ;;  %1264 = vst [vmem:[%s2044_s25 + $0x3b8] sm:$0xff] %v1130_v0 }
 0x1a5   : > { %v973_v1 = vpop.f32.mrb[60].mxu0  ;;  %v1134_v2 = vpop.f32.mrb[60].mxu1 }
 0x1a6   : > { %1265 = vst [vmem:[%s2044_s25 + $0x3c0] sm:$0xff] %v973_v1  ;;  %1267 = vst [vmem:[%s2044_s25 + $0x3d0] sm:$0xff] %v1134_v2  ;;  %v975_v3 = vpop.f32.mrb[61].mxu0  ;;  %v1136_v4 = vpop.f32.mrb[61].mxu1 }
 0x1a7   : > { %1266 = vst [vmem:[%s2044_s25 + $0x3c8] sm:$0xff] %v975_v3  ;;  %1268 = vst [vmem:[%s2044_s25 + $0x3d8] sm:$0xff] %v1136_v4 }
 0x1a9   : > { %v979_v5 = vpop.f32.mrb[62].mxu0  ;;  %v1140_v6 = vpop.f32.mrb[62].mxu1 }
 0x1aa   : > { %1269 = vst [vmem:[%s2044_s25 + $0x3e0] sm:$0xff] %v979_v5  ;;  %1271 = vst [vmem:[%s2044_s25 + $0x3f0] sm:$0xff] %v1140_v6  ;;  %v981_v7 = vpop.f32.mrb[63].mxu0  ;;  %v1142_v8 = vpop.f32.mrb[63].mxu1 }
 0x1ab   : > { %1270 = vst [vmem:[%s2044_s25 + $0x3e8] sm:$0xff] %v981_v7  ;;  %1272 = vst [vmem:[%s2044_s25 + $0x3f8] sm:$0xff] %v1142_v8 }
 0x1ac   : > { %s1510_s8 = sshll.u32 %s1667_s12, 13  ;;  %s1309_s15 = sshll.u32 %s2044_s25, 4  ;;  %s1310_s15 = int_to_ptr.vmem [resolvable:$true] %s1309_s15 }
 0x1ad   : > { %s1292_s21 = scalar_lea.hbm %s2218_s2, %s1510_s8  ;;  %s1681_s26 = smov 8192  }
 0x1ae   : > { %p2232_p11 = scmp.ne.s32.totalorder %s2224_s20, 0  ;;  %s1682_s29 = smov 40960  }
 0x1af   : > { %s1683_s30 = smov 16   ;;  %s1684_s3 = smov 512  }
 0x1b0   : > { %1515 = sst [smem:[#allocation8]] (%p2232_p11), %s1681_s26  ;;  %s1685_s12 = smov 32  }
 0x1b1   : > { %1516 = sst [smem:[#allocation8 + $0x1]] (%p2232_p11), %s1682_s29  ;;  %s1686_s4 = smov [#allocation7]  }
 0x1b2   : > { %1517 = sst [smem:[#allocation8 + $0x2]] (%p2232_p11), %s1683_s30  ;;  %s1687_s5 = smov 0  }
 0x1b3   : > { %1518 = sst [smem:[#allocation8 + $0x3]] (%p2232_p11), %s1684_s3 }
 0x1b4   : > { %1519 = sst [smem:[#allocation8 + $0x4]] (%p2232_p11), %s1684_s3 }
 0x1b5   : > { %1520 = sst [smem:[#allocation8 + $0x5]] (%p2232_p11), %s1685_s12 }
 0x1b6   : > { %1521 = dma.general (%p2232_p11), %s1310_s15, 16384, %s1292_s21, %s1274_s7, %s1686_s4, [#allocation8], %s1687_s5, 0  }
 0x1b7 PF: > { %p1533_p12 = scmp.ge.s32.totalorder %s1675_s14, 2  ;;  %s1337_s19 = sand.u32 1, %s1655_s9  }
 0x1b8   : > { %p2233_p13 = scmp.ne.s32.totalorder %s2225_s23, 0  ;;  %s1338_s27 = scalar_lea.sflag [#allocation5], %s1337_s19 }
 0x1ba   : > { %p1528_p1 = pnand %p1533_p12, %p2233_p13 }
 0x1bc   : > { %1650 = dma.done.wait (!%p1528_p1), %s1338_s27, 16384  }
 0x1bd   : > { %1652 = vsyncadd (!%p1528_p1), %s1338_s27, 4294950912  ;;  %s16_s14 = sadd.s32 1, %s1675_s14   ;;  %s2234_s9 = smov %s1659_s10 }
 0x1be   : > { %p13_p3 = scmp.ge.s32.totalorder %s16_s14, 7   ;;  %s2235_s10 = smov %s1663_s11 }
 0x1bf   : > { %s2236_s11 = smov %s1757_s22  ;;  %s2237_s12 = smov %s1671_s13 }
 0x1c0   : > { %s2238_s13 = smov %s2240_s17  ;;  %15 = sbr.rel (!%p13_p3) target bundleno = 5 (0x5), region = 117 }
 0x1c7   :  { %1343 = vsyncpa [#allocation4], 1 }
 0x1c8   :  { %1345 = vsyncpa [#allocation4 + $0x1], 1 }
 0x1c9   :  { %1346 = vsyncpa [#allocation5], 1 }
 0x1ca   :  { %1348 = vsyncpa [#allocation5 + $0x1], 1 }

</bundles_post_ra>
